<compile_context>
chip_gen: v5e
topology: v5e:2x2
jax: 0.10.0
libtpu: 0.0.40
codegen_flags: <defaults>
</compile_context>

<pallas_src>
import functools

import jax
import jax.numpy as jnp
from jax.experimental import pallas as pl
from jax.experimental.pallas import tpu as pltpu


def _conv_bn_relu_kernel(x_ref, w_ref, s_ref, b_ref, o_ref, *,
                         OH_TILE, OW, KH, KW, C, O_pad, stride, dilation, relu):
    # x_ref: (1, Hp, Wp, C)       padded NHWC input for one batch element
    # w_ref: (KH*KW*C, O_pad)     im2col-ordered weights, O padded to 128 lanes
    # s_ref: (1, O_pad)           fused BN scale (1.0 if no BN)
    # b_ref: (1, O_pad)           fused BN shift + conv bias (0.0 if none)
    # o_ref: (1, OH_TILE, OW, O_pad)
    r = pl.program_id(1)
    row_step = OH_TILE * stride
    row0 = pl.multiple_of(r * row_step, row_step)
    row_win = (OH_TILE - 1) * stride + dilation * (KH - 1) + 1

    # Single dynamic load of the input row window needed by this row tile.
    xwin = x_ref[0, pl.ds(row0, row_win), :, :]            # (row_win, Wp, C)

    # In-kernel im2col: concatenate the KH*KW shifted views along the lane
    # (channel) axis so the MXU sees one matmul with K = KH*KW*C instead of
    # KH*KW tiny matmuls with K = C.
    pieces = []
    for kh in range(KH):
        h0 = kh * dilation
        if stride == 1:
            rows = xwin[h0:h0 + OH_TILE]                   # (OH_TILE, Wp, C)
        else:
            # TODO(synk): strided sublane slicing; a wrapper-side
            # space-to-depth reshape would avoid the per-tap XLU copies.
            rows = xwin[h0:h0 + (OH_TILE - 1) * stride + 1:stride]
        for kw in range(KW):
            w0 = kw * dilation
            if stride == 1:
                cols = rows[:, w0:w0 + OW, :]              # (OH_TILE, OW, C)
            else:
                cols = rows[:, w0:w0 + (OW - 1) * stride + 1:stride, :]
            pieces.append(cols.reshape(OH_TILE * OW, C))
    patch = jnp.concatenate(pieces, axis=-1)               # (OH_TILE*OW, KH*KW*C)

    acc = jnp.dot(patch, w_ref[...], preferred_element_type=jnp.float32)
    out = acc * s_ref[0] + b_ref[0]                        # f32 epilogue
    if relu:
        out = jnp.maximum(out, 0.0)
    o_ref[0] = out.reshape(OH_TILE, OW, O_pad).astype(o_ref.dtype)


def _largest_divisor_leq(n, cap):
    cap = max(1, min(n, cap))
    for t in range(cap, 0, -1):
        if n % t == 0:
            return t
    return 1


class BasicConv:
    """JAX/Pallas port of the PyTorch BasicConv module (forward pass)."""

    def __init__(self, in_planes, out_planes, kernel_size, stride=1, padding=0,
                 dilation=1, groups=1, relu=True, bn=False, bias=False,
                 key=jax.random.PRNGKey(0), dtype=jnp.float32):
        if groups != 1:
            # TODO(synk): grouped convolution not implemented in this kernel.
            raise NotImplementedError("groups != 1 not supported")
        self.in_planes = in_planes
        self.out_channels = out_planes
        self.kernel_size = kernel_size
        self.stride = stride
        self.padding = padding
        self.dilation = dilation
        self.relu = relu
        self.dtype = dtype

        k_w, k_b = jax.random.split(key, 2)
        fan_in = in_planes * kernel_size * kernel_size
        bound = 1.0 / (fan_in ** 0.5)
        # PyTorch weight layout (O, C, KH, KW) -- kept for the reference impl.
        self.weight_oihw = jax.random.uniform(
            k_w, (out_planes, in_planes, kernel_size, kernel_size),
            dtype, minval=-bound, maxval=bound)

        conv_bias = (jax.random.uniform(k_b, (out_planes,), dtype,
                                        minval=-bound, maxval=bound)
                     if bias else jnp.zeros((out_planes,), dtype))

        if bn:
            # TODO(synk): BN implemented in eval mode (running stats folded to
            # scale/shift), not train-mode batch statistics of nn.BatchNorm2d.
            eps = 1e-5
            gamma = jnp.ones((out_planes,), dtype)
            beta = jnp.zeros((out_planes,), dtype)
            running_mean = jnp.zeros((out_planes,), dtype)
            running_var = jnp.ones((out_planes,), dtype)
            scale = gamma / jnp.sqrt(running_var + eps)
            shift = beta + (conv_bias - running_mean) * scale
        else:
            scale = jnp.ones((out_planes,), dtype)
            shift = conv_bias
        self.scale = scale            # (O,)  unpadded, for reference
        self.shift = shift            # (O,)

        # Kernel-side layouts: dense 2D weight slab + lane-padded O axis.
        O = out_planes
        self.O_pad = ((O + 127) // 128) * 128
        K_total = kernel_size * kernel_size * in_planes
        w_khkwco = jnp.transpose(self.weight_oihw, (2, 3, 1, 0))      # (KH,KW,C,O)
        w2d = w_khkwco.reshape(K_total, O)
        self.weight_2d = jnp.pad(w2d, ((0, 0), (0, self.O_pad - O)))  # (K_total, O_pad)
        self.scale_p = jnp.pad(scale.reshape(1, O), ((0, 0), (0, self.O_pad - O)))
        self.shift_p = jnp.pad(shift.reshape(1, O), ((0, 0), (0, self.O_pad - O)))

    def __call__(self, x_nchw):
        N, C, H, W = x_nchw.shape
        assert C == self.in_planes
        KH = KW = self.kernel_size
        s, p, d = self.stride, self.padding, self.dilation
        OH = (H + 2 * p - d * (KH - 1) - 1) // s + 1
        OW = (W + 2 * p - d * (KW - 1) - 1) // s + 1
        O, O_pad = self.out_channels, self.O_pad
        K_total = KH * KW * C

        # Glue: NCHW -> NHWC and explicit zero padding.
        x = jnp.transpose(x_nchw, (0, 2, 3, 1)).astype(self.dtype)
        x = jnp.pad(x, ((0, 0), (p, p), (p, p), (0, 0)))
        Hp, Wp = H + 2 * p, W + 2 * p

        # Row tile so that M = OH_TILE * OW ~ 128 (MXU-friendly, bounded VMEM,
        # and >1 grid step along the spatial axis for pipelining/megacore).
        OH_TILE = _largest_divisor_leq(OH, max(1, 128 // max(OW, 1)))
        n_row_tiles = OH // OH_TILE

        kernel = functools.partial(
            _conv_bn_relu_kernel,
            OH_TILE=OH_TILE, OW=OW, KH=KH, KW=KW, C=C, O_pad=O_pad,
            stride=s, dilation=d, relu=self.relu)

        out_nhwc = pl.pallas_call(
            kernel,
            out_shape=jax.ShapeDtypeStruct((N, OH, OW, O_pad), self.dtype),
            grid_spec=pltpu.PrefetchScalarGridSpec(
                num_scalar_prefetch=0,
                grid=(N, n_row_tiles),
                in_specs=[
                    # Full padded image per batch element; block index is
                    # constant along the row-tile axis so it is not re-DMA'd.
                    pl.BlockSpec((1, Hp, Wp, C), lambda n, r: (n, 0, 0, 0)),
                    pl.BlockSpec((K_total, O_pad), lambda n, r: (0, 0)),
                    pl.BlockSpec((1, O_pad), lambda n, r: (0, 0)),
                    pl.BlockSpec((1, O_pad), lambda n, r: (0, 0)),
                ],
                out_specs=pl.BlockSpec((1, OH_TILE, OW, O_pad),
                                       lambda n, r: (n, r, 0, 0)),
            ),
            compiler_params=pltpu.CompilerParams(
                dimension_semantics=("parallel", "parallel")),
        )(x, self.weight_2d, self.scale_p, self.shift_p)

        # Strip the lane padding and go back to NCHW (PyTorch convention).
        return jnp.transpose(out_nhwc[..., :O], (0, 3, 1, 2))


def _reference(x_nchw, module: BasicConv):
    """Pure-JAX reference using lax.conv_general_dilated (correctness check)."""
    y = jax.lax.conv_general_dilated(
        x_nchw, module.weight_oihw,
        window_strides=(module.stride, module.stride),
        padding=[(module.padding, module.padding)] * 2,
        rhs_dilation=(module.dilation, module.dilation),
        dimension_numbers=("NCHW", "OIHW", "NCHW"))
    y = y * module.scale.reshape(1, -1, 1, 1) + module.shift.reshape(1, -1, 1, 1)
    if module.relu:
        y = jnp.maximum(y, 0.0)
    return y


if __name__ == "__main__":
    key = jax.random.PRNGKey(0)
    k_x, k_p = jax.random.split(key)

    N, C, H, W = 2, 4, 16, 16
    out_planes, ksize, pad = 8, 3, 1

    x = jax.random.normal(k_x, (N, C, H, W), jnp.float32)

    module = BasicConv(in_planes=C, out_planes=out_planes, kernel_size=ksize,
                       stride=1, padding=pad, relu=True, bn=False, bias=False,
                       key=k_p)

    y = module(x)
    y = jax.block_until_ready(y)

    y_ref = _reference(x, module)
    assert y.shape == (N, out_planes, H, W)
    assert jnp.allclose(y, y_ref, atol=1e-4, rtol=1e-4), "mismatch vs reference"

    print("KERNEL_OK")
</pallas_src>

<mosaic_0001>
module attributes {stable_mosaic.version = 11 : i64} {
  func.func @_conv_bn_relu_kernel(%arg0: i32, %arg1: i32, %arg2: memref<1x18x18x4xf32, #tpu.memory_space<vmem>>, %arg3: memref<36x128xf32, #tpu.memory_space<vmem>>, %arg4: memref<1x128xf32, #tpu.memory_space<vmem>>, %arg5: memref<1x128xf32, #tpu.memory_space<vmem>>, %arg6: memref<1x8x16x128xf32, #tpu.memory_space<vmem>>) attributes {dimension_semantics = [#tpu.dimension_semantics<parallel>, #tpu.dimension_semantics<parallel>], iteration_bounds = array<i64: 2, 2>, scalar_prefetch = 0 : i64, scratch_operands = 0 : i64, tpu.core_type = #tpu.core_type<tc>, window_params = [{transform_indices = @transform_0, window_bounds = array<i64: 1, 18, 18, 4>}, {pipeline_mode = #tpu.pipeline_mode<synchronous>, transform_indices = @transform_1, window_bounds = array<i64: 36, 128>}, {pipeline_mode = #tpu.pipeline_mode<synchronous>, transform_indices = @transform_2, window_bounds = array<i64: 1, 128>}, {pipeline_mode = #tpu.pipeline_mode<synchronous>, transform_indices = @transform_3, window_bounds = array<i64: 1, 128>}, {transform_indices = @transform_4, window_bounds = array<i64: 1, 8, 16, 128>}]} {
    %c8_i32 = arith.constant 8 : i32
    %0 = arith.muli %arg1, %c8_i32 : i32
    %1 = tpu.assume_multiple %0, 8 : i32
    %c0 = arith.constant 0 : index
    %2 = arith.index_cast %1 : i32 to index
    %c0_0 = arith.constant 0 : index
    %c0_1 = arith.constant 0 : index
    %3 = vector.load %arg2[%c0, %2, %c0_0, %c0_1] : memref<1x18x18x4xf32, #tpu.memory_space<vmem>>, vector<1x10x18x4xf32>
    %4 = vector.shape_cast %3 : vector<1x10x18x4xf32> to vector<10x18x4xf32>
    %5 = vector.extract_strided_slice %4 {offsets = [0, 0, 0], sizes = [8, 18, 4], strides = [1, 1, 1]} : vector<10x18x4xf32> to vector<8x18x4xf32>
    %6 = vector.extract_strided_slice %5 {offsets = [0, 0, 0], sizes = [8, 16, 4], strides = [1, 1, 1]} : vector<8x18x4xf32> to vector<8x16x4xf32>
    %7 = vector.shape_cast %6 : vector<8x16x4xf32> to vector<128x4xf32>
    %8 = vector.extract_strided_slice %5 {offsets = [0, 1, 0], sizes = [8, 16, 4], strides = [1, 1, 1]} : vector<8x18x4xf32> to vector<8x16x4xf32>
    %9 = vector.shape_cast %8 : vector<8x16x4xf32> to vector<128x4xf32>
    %10 = vector.extract_strided_slice %5 {offsets = [0, 2, 0], sizes = [8, 16, 4], strides = [1, 1, 1]} : vector<8x18x4xf32> to vector<8x16x4xf32>
    %11 = vector.shape_cast %10 : vector<8x16x4xf32> to vector<128x4xf32>
    %12 = vector.extract_strided_slice %4 {offsets = [1, 0, 0], sizes = [8, 18, 4], strides = [1, 1, 1]} : vector<10x18x4xf32> to vector<8x18x4xf32>
    %13 = vector.extract_strided_slice %12 {offsets = [0, 0, 0], sizes = [8, 16, 4], strides = [1, 1, 1]} : vector<8x18x4xf32> to vector<8x16x4xf32>
    %14 = vector.shape_cast %13 : vector<8x16x4xf32> to vector<128x4xf32>
    %15 = vector.extract_strided_slice %12 {offsets = [0, 1, 0], sizes = [8, 16, 4], strides = [1, 1, 1]} : vector<8x18x4xf32> to vector<8x16x4xf32>
    %16 = vector.shape_cast %15 : vector<8x16x4xf32> to vector<128x4xf32>
    %17 = vector.extract_strided_slice %12 {offsets = [0, 2, 0], sizes = [8, 16, 4], strides = [1, 1, 1]} : vector<8x18x4xf32> to vector<8x16x4xf32>
    %18 = vector.shape_cast %17 : vector<8x16x4xf32> to vector<128x4xf32>
    %19 = vector.extract_strided_slice %4 {offsets = [2, 0, 0], sizes = [8, 18, 4], strides = [1, 1, 1]} : vector<10x18x4xf32> to vector<8x18x4xf32>
    %20 = vector.extract_strided_slice %19 {offsets = [0, 0, 0], sizes = [8, 16, 4], strides = [1, 1, 1]} : vector<8x18x4xf32> to vector<8x16x4xf32>
    %21 = vector.shape_cast %20 : vector<8x16x4xf32> to vector<128x4xf32>
    %22 = vector.extract_strided_slice %19 {offsets = [0, 1, 0], sizes = [8, 16, 4], strides = [1, 1, 1]} : vector<8x18x4xf32> to vector<8x16x4xf32>
    %23 = vector.shape_cast %22 : vector<8x16x4xf32> to vector<128x4xf32>
    %24 = vector.extract_strided_slice %19 {offsets = [0, 2, 0], sizes = [8, 16, 4], strides = [1, 1, 1]} : vector<8x18x4xf32> to vector<8x16x4xf32>
    %25 = vector.shape_cast %24 : vector<8x16x4xf32> to vector<128x4xf32>
    %26 = tpu.concatenate %7, %9, %11, %14, %16, %18, %21, %23, %25 in 1 : vector<128x4xf32>, vector<128x4xf32>, vector<128x4xf32>, vector<128x4xf32>, vector<128x4xf32>, vector<128x4xf32>, vector<128x4xf32>, vector<128x4xf32>, vector<128x4xf32> -> vector<128x36xf32>
    %c0_2 = arith.constant 0 : index
    %c0_3 = arith.constant 0 : index
    %27 = vector.load %arg3[%c0_2, %c0_3] : memref<36x128xf32, #tpu.memory_space<vmem>>, vector<36x128xf32>
    %cst = arith.constant dense<0.000000e+00> : vector<128x128xf32>
    %28 = tpu.matmul %26, %27, %cst {dimension_numbers = #tpu.dot_dimension_numbers<[1], [0], [0], [1], [0, 0, 1, 1], [], []>} : vector<128x36xf32>, vector<36x128xf32>, vector<128x128xf32> -> vector<128x128xf32>
    %c0_4 = arith.constant 0 : index
    %c0_5 = arith.constant 0 : index
    %29 = vector.load %arg4[%c0_4, %c0_5] : memref<1x128xf32, #tpu.memory_space<vmem>>, vector<1x128xf32>
    %30 = vector.shape_cast %29 : vector<1x128xf32> to vector<128xf32>
    %31 = vector.shape_cast %30 : vector<128xf32> to vector<1x128xf32>
    %32 = vector.broadcast %31 : vector<1x128xf32> to vector<128x128xf32>
    %33 = arith.mulf %28, %32 : vector<128x128xf32>
    %c0_6 = arith.constant 0 : index
    %c0_7 = arith.constant 0 : index
    %34 = vector.load %arg5[%c0_6, %c0_7] : memref<1x128xf32, #tpu.memory_space<vmem>>, vector<1x128xf32>
    %35 = vector.shape_cast %34 : vector<1x128xf32> to vector<128xf32>
    %36 = vector.shape_cast %35 : vector<128xf32> to vector<1x128xf32>
    %37 = vector.broadcast %36 : vector<1x128xf32> to vector<128x128xf32>
    %38 = arith.addf %33, %37 : vector<128x128xf32>
    %cst_8 = arith.constant 0.000000e+00 : f32
    %39 = vector.broadcast %cst_8 : f32 to vector<128x128xf32>
    %40 = arith.maximumf %38, %39 : vector<128x128xf32>
    %41 = vector.shape_cast %40 : vector<128x128xf32> to vector<8x16x128xf32>
    %c0_9 = arith.constant 0 : index
    %c0_10 = arith.constant 0 : index
    %c0_11 = arith.constant 0 : index
    %c0_12 = arith.constant 0 : index
    %42 = vector.load %arg6[%c0_9, %c0_10, %c0_11, %c0_12] : memref<1x8x16x128xf32, #tpu.memory_space<vmem>>, vector<1x8x16x128xf32>
    %43 = vector.shape_cast %42 : vector<1x8x16x128xf32> to vector<8x16x128xf32>
    %44 = vector.shape_cast %41 : vector<8x16x128xf32> to vector<1x8x16x128xf32>
    tpu.vector_store %arg6[%c0_9, %c0_10, %c0_11, %c0_12], %44 {strides = array<i32>} : memref<1x8x16x128xf32, #tpu.memory_space<vmem>>, vector<1x8x16x128xf32>,
    return
  }
  func.func @transform_0(%arg0: i32, %arg1: i32) -> (i32, i32, i32, i32) {
    %c0_i32 = arith.constant 0 : i32
    %c0_i32_0 = arith.constant 0 : i32
    %c0_i32_1 = arith.constant 0 : i32
    %c0_i32_2 = arith.constant 0 : i32
    return %arg0, %c0_i32, %c0_i32_0, %c0_i32_1 : i32, i32, i32, i32
  }
  func.func @transform_1(%arg0: i32, %arg1: i32) -> (i32, i32) {
    %c0_i32 = arith.constant 0 : i32
    %c0_i32_0 = arith.constant 0 : i32
    %c0_i32_1 = arith.constant 0 : i32
    return %c0_i32, %c0_i32_0 : i32, i32
  }
  func.func @transform_2(%arg0: i32, %arg1: i32) -> (i32, i32) {
    %c0_i32 = arith.constant 0 : i32
    %c0_i32_0 = arith.constant 0 : i32
    %c0_i32_1 = arith.constant 0 : i32
    return %c0_i32, %c0_i32_0 : i32, i32
  }
  func.func @transform_3(%arg0: i32, %arg1: i32) -> (i32, i32) {
    %c0_i32 = arith.constant 0 : i32
    %c0_i32_0 = arith.constant 0 : i32
    %c0_i32_1 = arith.constant 0 : i32
    return %c0_i32, %c0_i32_0 : i32, i32
  }
  func.func @transform_4(%arg0: i32, %arg1: i32) -> (i32, i32, i32, i32) {
    %c0_i32 = arith.constant 0 : i32
    %c0_i32_0 = arith.constant 0 : i32
    %c0_i32_1 = arith.constant 0 : i32
    return %arg0, %arg1, %c0_i32, %c0_i32_0 : i32, i32, i32, i32
  }
}

</mosaic_0001>

<bundles_post_ra>
// kernel: tpu_custom_call.1
= control target key start
LH: loop header
LB: loop body
LE: loop exit
PB: predicated region body
PF: predicated region fallthrough
CT: control target
= control target key end

     0   :  { %9 = vsyncpa [#allocation3], 0  ;;  %s2420_s0 = inlined_call_operand.vmem [shape: f32[2,18,18,4], index: 0, kind: input, shape index: {}]   ;;  %s2421_s1 = inlined_call_operand.vmem [shape: f32[36,128], index: 1, kind: input, shape index: {}]   ;;  %s2422_s2 = inlined_call_operand.vmem [shape: f32[1,128], index: 2, kind: input, shape index: {}]   ;;  %s2423_s3 = inlined_call_operand.vmem [shape: f32[1,128], index: 3, kind: input, shape index: {}]   ;;  %s2424_s4 = inlined_call_operand.hbm [shape: f32[2,16,16,128], index: 4, kind: output, shape index: {}]  }
   0x1   :  { %11 = vsyncpa [#allocation3 + $0x1], 0  ;;  %s1450_s15 = smov 0   ;;  %s1452_s16 = smov 0  }
   0x2   :  { %s1454_s17 = smov 0   ;;  %s1456_s18 = smov 0  }
   0x3   :  { %s1458_s19 = smov 0   ;;  %s1460_s20 = smov 0  }
   0x4   :  { %s1462_s21 = smov 0   ;;  %s1464_s22 = smov 0  }
   0x5 LB: > { %s1188_s23 = sadd.s32 4294967295, %s1414_s22   ;;  %s1189_s24 = sadd.s32 4294967294, %s1414_s22   ;;  %s1414_s22 = sphi %s1464_s22, %s17_s22   ;;  %s1410_s21 = sphi %s1462_s21, %s2448_s21   ;;  %s1406_s20 = sphi %s1460_s20, %s2447_s20   ;;  %s1402_s19 = sphi %s1458_s19, %s2446_s19   ;;  %s1398_s18 = sphi %s1456_s18, %s2445_s18   ;;  %s1394_s17 = sphi %s1454_s17, %s2444_s17   ;;  %s1390_s16 = sphi %s1452_s16, %s2443_s16   ;;  %s1386_s15 = sphi %s1450_s15, %s2442_s15  }
   0x6   : > { %s26_s25 = sadd.s32 1, %s1406_s20  ;;  %s29_s26 = sadd.s32 1, %s1410_s21 }
   0x7   : > { %p27_p0 = scmp.ge.s32.totalorder %s26_s25, 2  ;;  %p137_p1 = scmp.ne.s32.totalorder %s1394_s17, %s1390_s16 }
   0x8   : > { %p138_p2 = scmp.eq.s32.totalorder %s1188_s23, 3  ;;  %p143_p5 = scmp.ne.s32.totalorder %s1390_s16, %s1386_s15 }
   0x9   : > { %s2450_s25 = smov (%p27_p0, %s26_s25), 0  ;;  %s2452_s26 = smov (!%p27_p0, %s29_s26), %s1410_s21 }
   0xa   : > { %s123_s27 = ssub.s32 %s1406_s20, %s2450_s25  ;;  %p1501_p3 = por %p138_p2, %p137_p1 }
   0xb   : > { %p31_p4 = scmp.ge.s32.totalorder %s2452_s26, 2  ;;  %p144_p6 = scmp.eq.s32.totalorder %s1189_s24, 3 }
   0xc   : > { %p1192_p7 = scmp.ge.s32.totalorder %s1414_s22, 1  ;;  %p179_p9 = scmp.lt.s32.totalorder %s1414_s22, 5 }
   0xd   : > { %s2454_s26 = smov (%p31_p4, %s2452_s26), 0  ;;  %p1510_p8 = por %p144_p6, %p143_p5 }
   0xe   : > { %s122_s30 = ssub.s32 %s1410_s21, %s2454_s26  ;;  %s127_s5 = sadd.s32 1, %s1394_s17 }
   0xf   : > { %s124_s6 = sor.u32 %s123_s27, %s122_s30  ;;  %p180_p10 = pnand %p1192_p7, %p179_p9 }
  0x10   : > { %p125_p11 = scmp.eq.s32.totalorder %s124_s6, 0 }
  0x11   : > { %183 = sbr.rel (%p180_p10) target bundleno = 624 (0x270), region = 36 }
  0x12   : > { %s1519_s7 = scalar_select %p125_p11, %s1394_s17, %s127_s5  }
  0x16   : > { %p205_p12 = scmp.lt.s32.totalorder %s1402_s19, 1  ;;  %s1196_s9 = smul.u32 192, %s1398_s18  ;;  %vm268_vm0 = vcmask 1046528   ;;  %vm309_vm1 = vcmask 1045504   ;;  %vm777_vm2 = vcmask 64512   ;;  %vm760_vm3 = vcmask 31744  }
  0x17   : > { %s1416_s23 = smov 4   ;;  %s1417_s24 = smov 8   ;;  %vm794_vm4 = vcmask 97280   ;;  %vm811_vm5 = vcmask 130048   ;;  %vm950_vm6 = vcmask 1043456   ;;  %vm828_vm7 = vcmask 162816  }
  0x18   : > { %s206_s8 = scalar_select %p205_p12, %s1402_s19, 1  ;;  %vm845_vm8 = vcmask 195584   ;;  %vm862_vm9 = vcmask 228352   ;;  %vm879_vm10 = vcmask 261120   ;;  %vm901_vm11 = vcmask 293888  }
  0x19   : > { %s1418_s27 = smov 12   ;;  %s1419_s30 = smov 16  }
  0x1a   : > { %s1237_s10 = smul.u32 432, %s206_s8  ;;  %s1420_s5 = smov 24  }
  0x1b   : > { %s1421_s6 = smov 20   ;;  %s1422_s8 = smov 28  }
  0x1c   : > { %s209_s13 = scalar_lea.vmem %s2420_s0, %s1237_s10  ;;  %s1217_s10 = sshll.u32 %s1402_s19, 5 }
  0x1d   : > { %s1527_s14 = scalar_lea.vmem %s209_s13, %s1196_s9  ;;  %s1423_s9 = smov 32  }
  0x1e   : > { %v1530_v0 = vld [vmem:[%s1527_s14 + $0x30] sm:$0xff]  ;;  %v1533_v1 = vld [vmem:[%s1527_s14 + $0x38] sm:$0xff]  ;;  %v1541_v5 = vld [vmem:[%s1527_s14 + $0x20] sm:$0xff] }
  0x1f   : > { %v1536_v2 = vld [vmem:[%s1527_s14 + $0x18] sm:$0xff]  ;;  %v279_v3 = vrot.slane %v1530_v0, 1  ;;  %v280_v4 = vrot.slane %v1533_v1, 1  ;;  %v1545_v7 = vld [vmem:[%s1527_s14] sm:$0xff]  ;;  %v1548_v8 = vld [vmem:[%s1527_s14 + $0x8] sm:$0xff]  ;;  %v275_v9 = vrot.slane %v1541_v5, 1 }
  0x20   : > { %v274_v6 = vrot.slane %v1536_v2, 1  ;;  %v269_v10 = vrot.slane %v1545_v7, 1  ;;  %v270_v11 = vrot.slane %v1548_v8, 1  ;;  %v1554_v12 = vld [vmem:[%s1527_s14 + $0x40] sm:$0x3]  ;;  %v1588_v25 = vld [vmem:[%s1527_s14 + $0x68] sm:$0xff] }
  0x21   : > { %v1557_v13 = vsel %vm268_vm0, %v279_v3, %v280_v4  ;;  %v1560_v14 = vld [vmem:[%s1527_s14 + $0x28] sm:$0x3]  ;;  %v1563_v15 = vld [vmem:[%s1527_s14 + $0x10] sm:$0x3]  ;;  %v282_v18 = vrot.slane %v1554_v12, 1  ;;  %v1585_v24 = vld [vmem:[%s1527_s14 + $0x60] sm:$0xff] }
  0x22   : > { %384 = vrot.lane.b32.xlu2 %v1557_v13, %s1416_s23  ;;  %v1568_v16 = vsel %vm268_vm0, %v274_v6, %v275_v9  ;;  %v271_v17 = vsel %vm268_vm0, %v269_v10, %v270_v11  ;;  %v277_v19 = vrot.slane %v1560_v14, 1  ;;  %v272_v20 = vrot.slane %v1563_v15, 1  ;;  %v1591_v26 = vld [vmem:[%s1527_s14 + $0x50] sm:$0xff]  ;;  %v1594_v27 = vld [vmem:[%s1527_s14 + $0x58] sm:$0x3]  ;;  %v1597_v28 = vld [vmem:[%s1527_s14 + $0x48] sm:$0xff] }
  0x23   : > { %380 = vrot.lane.b32.xlu1 %v1568_v16, %s1416_s23  ;;  %376 = vrot.lane.b32.xlu0 %v271_v17, %s1416_s23  ;;  %v1578_v21 = vsel %vm268_vm0, %v280_v4, %v282_v18  ;;  %2432 = vst [vmem:[#allocation5_spill] sm:$0xff] %v1591_v26  ;;  %v289_v29 = vrot.slane %v1585_v24, 1  ;;  %v290_v30 = vrot.slane %v1588_v25, 1  ;;  %v285_v31 = vrot.slane %v1591_v26, 1  ;;  %v1619_v37 = vld [vmem:[%s1527_s14 + $0x80] sm:$0xff]  ;;  %v1625_v39 = vld [vmem:[%s1527_s14 + $0x78] sm:$0xff] }
  0x24   : > { %v1581_v22 = vsel %vm268_vm0, %v275_v9, %v277_v19  ;;  %v273_v23 = vsel %vm268_vm0, %v270_v11, %v272_v20  ;;  %v287_v32 = vrot.slane %v1594_v27, 1  ;;  %v284_v33 = vrot.slane %v1597_v28, 1  ;;  %v1622_v38 = vld [vmem:[%s1527_s14 + $0x88] sm:$0x3]  ;;  %v1628_v40 = vld [vmem:[%s1527_s14 + $0x70] sm:$0x3] }
  0x25   : > { %v1610_v34 = vsel %vm268_vm0, %v289_v29, %v290_v30  ;;  %v295_v41 = vrot.slane %v1619_v37, 1  ;;  %v297_v42 = vrot.slane %v1622_v38, 1  ;;  %v294_v43 = vrot.slane %v1625_v39, 1  ;;  %v1650_v48 = vld [vmem:[%s1527_s14 + $0xa8] sm:$0xff]  ;;  %v1653_v49 = vld [vmem:[%s1527_s14 + $0xb0] sm:$0xff]  ;;  %v1656_v50 = vld [vmem:[%s1527_s14 + $0x98] sm:$0xff] }
  0x26   : > { %v1613_v35 = vsel %vm268_vm0, %v285_v31, %v287_v32  ;;  %v1616_v36 = vsel %vm268_vm0, %v284_v33, %v285_v31  ;;  %v292_v44 = vrot.slane %v1628_v40, 1  ;;  %v1659_v51 = vld [vmem:[%s1527_s14 + $0xa0] sm:$0x3]  ;;  %v1662_v52 = vld [vmem:[%s1527_s14 + $0x90] sm:$0xff]  ;;  %v304_v53 = vrot.slane %v1650_v48, 1 }
  0x27   : > { %2433 = vst [vmem:[#allocation6_spill] sm:$0xff] %v1613_v35  ;;  %v1641_v45 = vsel %vm268_vm0, %v295_v41, %v297_v42  ;;  %v1644_v46 = vsel %vm268_vm0, %v294_v43, %v295_v41  ;;  %v305_v54 = vrot.slane %v1653_v49, 1  ;;  %v300_v55 = vrot.slane %v1656_v50, 1  ;;  %v1685_v61 = vld [vmem:[%s1527_s14 + $0xb8] sm:$0x3] }
  0x28   : > { %2434 = vst [vmem:[#allocation7_spill] sm:$0xff] %v1641_v45  ;;  %v1647_v47 = vsel %vm268_vm0, %v290_v30, %v292_v44  ;;  %v302_v56 = vrot.slane %v1659_v51, 1  ;;  %v299_v57 = vrot.slane %v1662_v52, 1  ;;  %v311_v62 = vrot.slane %v1548_v8, 2 }
  0x29   : > { %2435 = vst [vmem:[#allocation8_spill] sm:$0xff] %v1644_v46  ;;  %v1676_v58 = vsel %vm268_vm0, %v304_v53, %v305_v54  ;;  %v313_v63 = vrot.slane %v1563_v15, 2  ;;  %v310_v3 = vrot.slane %v1545_v7, 2  ;;  %v307_v4 = vrot.slane %v1685_v61, 1 }
  0x2a   : > { %386 = vrot.lane.b32.xlu2 %v1578_v21, %s1416_s23  ;;  %v1679_v59 = vsel %vm268_vm0, %v300_v55, %v302_v56  ;;  %v1682_v60 = vsel %vm268_vm0, %v299_v57, %v300_v55  ;;  %v320_v11 = vrot.slane %v1530_v0, 2  ;;  %v321_v15 = vrot.slane %v1533_v1, 2 }
  0x2b   : > { %382 = vrot.lane.b32.xlu1 %v1581_v22, %s1416_s23  ;;  %378 = vrot.lane.b32.xlu0 %v273_v23, %s1416_s23  ;;  %v314_v6 = vsel %vm309_vm1, %v311_v62, %v313_v63  ;;  %v312_v9 = vsel %vm309_vm1, %v310_v3, %v311_v62  ;;  %v1700_v10 = vsel %vm268_vm0, %v305_v54, %v307_v4  ;;  %v316_v17 = vrot.slane %v1541_v5, 2 }
  0x2c   : > { %v318_v18 = vrot.slane %v1560_v14, 2  ;;  %v315_v19 = vrot.slane %v1536_v2, 2  ;;  %v1712_v20 = vsel %vm309_vm1, %v320_v11, %v321_v15  ;;  %v326_v14 = vrot.slane %v1591_v26, 2 }
  0x2d   : > { %v328_v30 = vrot.slane %v1594_v27, 2  ;;  %v325_v31 = vrot.slane %v1597_v28, 2  ;;  %v323_v32 = vrot.slane %v1554_v12, 2  ;;  %v335_v12 = vrot.slane %v1625_v39, 2 }
  0x2e   : > { %v1715_v23 = vsel %vm309_vm1, %v316_v17, %v318_v18  ;;  %v1718_v29 = vsel %vm309_vm1, %v315_v19, %v316_v17  ;;  %v336_v27 = vrot.slane %v1619_v37, 2  ;;  %v331_v43 = vrot.slane %v1588_v25, 2 }
  0x2f   : > { %v1731_v33 = vsel %vm309_vm1, %v326_v14, %v328_v30  ;;  %v1734_v41 = vsel %vm309_vm1, %v325_v31, %v326_v14  ;;  %v1737_v42 = vsel %vm309_vm1, %v321_v15, %v323_v32  ;;  %v333_v44 = vrot.slane %v1628_v40, 2  ;;  %v1817_v31 = vld [vmem:[%s1527_s14 + $0xc8] sm:$0xff]  ;;  %v1820_v32 = vld [vmem:[%s1527_s14 + $0xc0] sm:$0xff] }
  0x30   : > { %v330_v53 = vrot.slane %v1585_v24, 2  ;;  %v1751_v54 = vsel %vm309_vm1, %v335_v12, %v336_v27  ;;  %v341_v40 = vrot.slane %v1656_v50, 2  ;;  %v343_v57 = vrot.slane %v1659_v51, 2 }
  0x31   : > { %2436 = vst [vmem:[#allocation9_spill] sm:$0xff] %v1751_v54  ;;  %v1754_v55 = vsel %vm309_vm1, %v331_v43, %v333_v44  ;;  %v340_v62 = vrot.slane %v1662_v52, 2  ;;  %v338_v63 = vrot.slane %v1622_v38, 2  ;;  %v346_v38 = vrot.slane %v1653_v49, 2 }
  0x32   : > { %392 = vrot.lane.b32.xlu2 %v1610_v34, %s1416_s23  ;;  %v1757_v56 = vsel %vm309_vm1, %v330_v53, %v331_v43  ;;  %v1770_v3 = vsel %vm309_vm1, %v341_v40, %v343_v57  ;;  %v348_v51 = vrot.slane %v1685_v61, 2 }
  0x33   : > { %390 = vrot.lane.b32.xlu1 %v1613_v35, %s1416_s23  ;;  %388 = vrot.lane.b32.xlu0 %v1616_v36, %s1416_s23  ;;  %v1773_v4 = vsel %vm309_vm1, %v340_v62, %v341_v40 }
  0x34   : > { %v1788_v11 = vsel %vm309_vm1, %v346_v38, %v348_v51 }
  0x3a   : > { %398 = vrot.lane.b32.xlu2 %v1641_v45, %s1416_s23 }
  0x3b   : > { %396 = vrot.lane.b32.xlu1 %v1644_v46, %s1416_s23  ;;  %394 = vrot.lane.b32.xlu0 %v1647_v47, %s1416_s23 }
  0x42   : > { %404 = vrot.lane.b32.xlu2 %v1676_v58, %s1416_s23 }
  0x43   : > { %402 = vrot.lane.b32.xlu1 %v1679_v59, %s1416_s23  ;;  %400 = vrot.lane.b32.xlu0 %v1682_v60, %s1416_s23 }
  0x4a   : > { %426 = vrot.lane.b32.xlu2 %v314_v6, %s1417_s24  ;;  %v1776_v6 = vsel %vm309_vm1, %v336_v27, %v338_v63 }
  0x4b   : > { %424 = vrot.lane.b32.xlu1 %v312_v9, %s1417_s24  ;;  %406 = vrot.lane.b32.xlu0 %v1700_v10, %s1416_s23  ;;  %v345_v9 = vrot.slane %v1650_v48, 2 }
  0x4d   : > { %v1791_v15 = vsel %vm309_vm1, %v345_v9, %v346_v38 }
  0x52   : > { %432 = vrot.lane.b32.xlu2 %v1712_v20, %s1417_s24 }
  0x53   : > { %430 = vrot.lane.b32.xlu1 %v1715_v23, %s1417_s24  ;;  %428 = vrot.lane.b32.xlu0 %v1718_v29, %s1417_s24 }
  0x5a   : > { %438 = vrot.lane.b32.xlu2 %v1731_v33, %s1417_s24 }
  0x5b   : > { %436 = vrot.lane.b32.xlu1 %v1734_v41, %s1417_s24  ;;  %434 = vrot.lane.b32.xlu0 %v1737_v42, %s1417_s24 }
  0x62   : > { %444 = vrot.lane.b32.xlu2 %v1751_v54, %s1417_s24 }
  0x63   : > { %442 = vrot.lane.b32.xlu1 %v1754_v55, %s1417_s24  ;;  %440 = vrot.lane.b32.xlu0 %v1757_v56, %s1417_s24 }
  0x6a   : > { %450 = vrot.lane.b32.xlu2 %v1770_v3, %s1417_s24 }
  0x6b   : > { %448 = vrot.lane.b32.xlu1 %v1773_v4, %s1417_s24  ;;  %446 = vrot.lane.b32.xlu0 %v1776_v6, %s1417_s24 }
  0x72   : > { %472 = vrot.lane.b32.xlu2 %v1536_v2, %s1418_s27 }
  0x73   : > { %454 = vrot.lane.b32.xlu1 %v1788_v11, %s1417_s24  ;;  %452 = vrot.lane.b32.xlu0 %v1791_v15, %s1417_s24 }
  0x7a   : > { %478 = vrot.lane.b32.xlu2 %v1533_v1, %s1418_s27 }
  0x7b   : > { %476 = vrot.lane.b32.xlu1 %v1530_v0, %s1418_s27  ;;  %474 = vrot.lane.b32.xlu0 %v1541_v5, %s1418_s27 }
  0x7c   : > { %v385_v61 = vpop.permute.xlu2 %384 }
  0x82   : > { %484 = vrot.lane.b32.xlu2 %v1585_v24, %s1418_s27 }
  0x83   : > { %482 = vrot.lane.b32.xlu1 %v1591_v26, %s1418_s27  ;;  %480 = vrot.lane.b32.xlu0 %v1597_v28, %s1418_s27 }
  0x84   : > { %v1804_v17 = vpop.permute.xlu2 %386 }
  0x8a   : > { %490 = vrot.lane.b32.xlu2 %v1619_v37, %s1418_s27 }
  0x8b   : > { %488 = vrot.lane.b32.xlu1 %v1625_v39, %s1418_s27  ;;  %486 = vrot.lane.b32.xlu0 %v1588_v25, %s1418_s27 }
  0x8c   : > { %v1809_v18 = vpop.permute.xlu2 %392 }
  0x92   : > { %496 = vrot.lane.b32.xlu2 %v1650_v48, %s1418_s27 }
  0x93   : > { %494 = vrot.lane.b32.xlu1 %v1656_v50, %s1418_s27  ;;  %492 = vrot.lane.b32.xlu0 %v1662_v52, %s1418_s27 }
  0x94   : > { %v1814_v19 = vpop.permute.xlu2 %398 }
  0x95   : > { %v381_v14 = vpop.permute.xlu1 %380  ;;  %v377_v30 = vpop.permute.xlu0 %376 }
  0x9a   : > { %502 = vrot.lane.b32.xlu2 %v1817_v31, %s1418_s27 }
  0x9b   : > { %500 = vrot.lane.b32.xlu1 %v1820_v32, %s1418_s27  ;;  %498 = vrot.lane.b32.xlu0 %v1653_v49, %s1418_s27  ;;  %s1221_s27 = sshll.u32 %s1398_s18, 4 }
  0x9c   : > { %v1825_v12 = vpop.permute.xlu2 %404  ;;  %s1104_s11 = sadd.s32 %s1221_s27, %s1217_s10 }
  0x9d   : > { %v383_v27 = vpop.permute.xlu1 %382  ;;  %v379_v43 = vpop.permute.xlu0 %378  ;;  %s1218_s12 = sshll.u32 %s1104_s11, 3  ;;  %s1340_s11 = scalar_lea.hbm %s2424_s4, 512 }
  0x9e   : > { %v762_v44 = vsel %vm760_vm3, %v1548_v8, %v379_v43 }
  0xa2   : > { %524 = vrot.lane.b32.xlu2 %v1557_v13, %s1419_s30 }
  0xa3   : > { %522 = vrot.lane.b32.xlu1 %v1581_v22, %s1419_s30  ;;  %520 = vrot.lane.b32.xlu0 %v1568_v16, %s1419_s30  ;;  %v765_v16 = vsel %vm760_vm3, %v1530_v0, %v385_v61 }
  0xa4   : > { %v427_v53 = vpop.permute.xlu2 %426 }
  0xa5   : > { %v391_v40 = vpop.permute.xlu1 %390  ;;  %v1836_v57 = vsel %vm777_vm2, %v762_v44, %v427_v53  ;;  %v389_v62 = vpop.permute.xlu0 %388 }
  0xa6   : > { %v768_v51 = vsel %vm760_vm3, %v1591_v26, %v391_v40  ;;  %v761_v40 = vsel %vm760_vm3, %v1545_v7, %v377_v30  ;;  %v353_v7 = vrot.slane %v1820_v32, 1  ;;  %v354_v30 = vrot.slane %v1817_v31, 1 }
  0xaa   : > { %530 = vrot.lane.b32.xlu2 %v1613_v35, %s1419_s30 }
  0xab   : > { %528 = vrot.lane.b32.xlu1 %v1616_v36, %s1419_s30  ;;  %526 = vrot.lane.b32.xlu0 %v1578_v21, %s1419_s30 }
  0xac   : > { %v433_v22 = vpop.permute.xlu2 %432 }
  0xad   : > { %v397_v8 = vpop.permute.xlu1 %396  ;;  %v1847_v63 = vsel %vm777_vm2, %v765_v16, %v433_v22  ;;  %v395_v38 = vpop.permute.xlu0 %394 }
  0xae   : > { %v771_v53 = vsel %vm760_vm3, %v1625_v39, %v397_v8 }
  0xb2   : > { %536 = vrot.lane.b32.xlu2 %v1644_v46, %s1419_s30 }
  0xb3   : > { %534 = vrot.lane.b32.xlu1 %v1647_v47, %s1419_s30  ;;  %532 = vrot.lane.b32.xlu0 %v1610_v34, %s1419_s30 }
  0xb4   : > { %v439_v9 = vpop.permute.xlu2 %438 }
  0xb5   : > { %v403_v61 = vpop.permute.xlu1 %402  ;;  %v1858_v43 = vsel %vm777_vm2, %v768_v51, %v439_v9  ;;  %v401_v44 = vpop.permute.xlu0 %400 }
  0xb6   : > { %v774_v8 = vsel %vm760_vm3, %v1656_v50, %v403_v61  ;;  %v1898_v61 = vsel %vm268_vm0, %v353_v7, %v354_v30 }
  0xba   : > { %544 = vrot.lane.b32.xlu2 %v1676_v58, %s1419_s30 }
  0xbb   : > { %540 = vrot.lane.b32.xlu1 %v1682_v60, %s1419_s30  ;;  %538 = vrot.lane.b32.xlu0 %v1641_v45, %s1419_s30 }
  0xbc   : > { %v445_v16 = vpop.permute.xlu2 %444 }
  0xbd   : > { %v1871_v22 = vsel %vm777_vm2, %v771_v53, %v445_v16  ;;  %v425_v51 = vpop.permute.xlu1 %424  ;;  %v1873_v9 = vpop.permute.xlu0 %406  ;;  %v763_v16 = vsel %vm760_vm3, %v1536_v2, %v381_v14  ;;  %v767_v14 = vsel %vm760_vm3, %v1597_v28, %v389_v62  ;;  %v770_v62 = vsel %vm760_vm3, %v1588_v25, %v395_v38 }
  0xbe   : > { %v778_v35 = vsel %vm777_vm2, %v761_v40, %v425_v51  ;;  %v764_v40 = vsel %vm760_vm3, %v1541_v5, %v383_v27  ;;  %v358_v5 = vrot.slane %v1820_v32, 2  ;;  %v773_v38 = vsel %vm760_vm3, %v1662_v52, %v401_v44 }
  0xbf   : > { %v776_v44 = vsel %vm760_vm3, %v1653_v49, %v1873_v9 }
  0xc2   : > { %632 = vrot.lane.b32.xlu2 %v1662_v52, %s1420_s5  ;;  %v775_v52 = vsel %vm760_vm3, %v1650_v48, %v1825_v12 }
  0xc3   : > { %592 = vrot.lane.b32.xlu1 %v1791_v15, %s1421_s6  ;;  %584 = vrot.lane.b32.xlu0 %v1751_v54, %s1421_s6 }
  0xc4   : > { %v451_v53 = vpop.permute.xlu2 %450 }
  0xc5   : > { %v1891_v51 = vsel %vm777_vm2, %v774_v8, %v451_v53  ;;  %v431_v45 = vpop.permute.xlu1 %430  ;;  %v429_v26 = vpop.permute.xlu0 %428 }
  0xc6   : > { %v781_v54 = vsel %vm777_vm2, %v764_v40, %v431_v45  ;;  %v780_v46 = vsel %vm777_vm2, %v763_v16, %v429_v26  ;;  %v359_v26 = vrot.slane %v1817_v31, 2  ;;  %v766_v45 = vsel %vm760_vm3, %v1533_v1, %v1804_v17 }
  0xc7   : > { %v769_v17 = vsel %vm760_vm3, %v1585_v24, %v1809_v18 }
  0xca   : > { %688 = vrot.lane.b32.xlu2 %v1898_v61, %s1422_s8 }
  0xcb   : > { %680 = vrot.lane.b32.xlu1 %v1682_v60, %s1422_s8  ;;  %640 = vrot.lane.b32.xlu0 %v1820_v32, %s1420_s5  ;;  %v1921_v32 = vsel %vm309_vm1, %v358_v5, %v359_v26 }
  0xcc   : > { %v473_v2 = vpop.permute.xlu2 %472 }
  0xcd   : > { %v1914_v27 = vsel %vm794_vm4, %v778_v35, %v473_v2  ;;  %v437_v7 = vpop.permute.xlu1 %436  ;;  %v435_v60 = vpop.permute.xlu0 %434 }
  0xce   : > { %v784_v8 = vsel %vm777_vm2, %v767_v14, %v437_v7  ;;  %v783_v53 = vsel %vm777_vm2, %v766_v45, %v435_v60 }
  0xd2   : > { %568 = vrot.lane.b32.xlu2 %v1718_v29, %s1421_s6 }
  0xd3   : > { %736 = vrot.lane.b32.xlu1 %v1921_v32, %s1423_s9  ;;  %728 = vrot.lane.b32.xlu0 %v1773_v4, %s1423_s9 }
  0xd4   : > { %v479_v35 = vpop.permute.xlu2 %478 }
  0xd5   : > { %v1935_v16 = vsel %vm794_vm4, %v781_v54, %v479_v35  ;;  %v443_v40 = vpop.permute.xlu1 %442  ;;  %v441_v29 = vpop.permute.xlu0 %440  ;;  %v772_v54 = vsel %vm760_vm3, %v1619_v37, %v1814_v19 }
  0xd6   : > { %v787_v2 = vsel %vm777_vm2, %v770_v62, %v443_v40  ;;  %v786_v5 = vsel %vm777_vm2, %v769_v17, %v441_v29 }
  0xda   : > { %616 = vrot.lane.b32.xlu2 %v1530_v0, %s1420_s5 }
  0xdb   : > { %546 = vrot.lane.b32.xlu1 %v1700_v10, %s1419_s30  ;;  %576 = vrot.lane.b32.xlu0 %v1734_v41, %s1421_s6 }
  0xdc   : > { %v485_v18 = vpop.permute.xlu2 %484 }
  0xdd   : > { %v1951_v45 = vsel %vm794_vm4, %v784_v8, %v485_v18  ;;  %v449_v14 = vpop.permute.xlu1 %448  ;;  %v447_v7 = vpop.permute.xlu0 %446 }
  0xde   : > { %v790_v0 = vsel %vm777_vm2, %v773_v38, %v449_v14  ;;  %v789_v60 = vsel %vm777_vm2, %v772_v54, %v447_v7  ;;  %v240_v54 = vld [vmem:[%s1527_s14 + $0xd0] sm:$0x3] }
  0xe2   : > { %594 = vrot.lane.b32.xlu2 %v1788_v11, %s1421_s6 }
  0xe3   : > { %586 = vrot.lane.b32.xlu1 %v1776_v6, %s1421_s6  ;;  %624 = vrot.lane.b32.xlu0 %v1585_v24, %s1420_s5 }
  0xe4   : > { %v491_v19 = vpop.permute.xlu2 %490 }
  0xe5   : > { %v1968_v8 = vsel %vm794_vm4, %v787_v2, %v491_v19  ;;  %v455_v35 = vpop.permute.xlu1 %454  ;;  %v453_v17 = vpop.permute.xlu0 %452 }
  0xe6   : > { %v793_v62 = vsel %vm777_vm2, %v776_v44, %v455_v35  ;;  %v792_v40 = vsel %vm777_vm2, %v775_v52, %v453_v17 }
  0xea   : > { %634 = vrot.lane.b32.xlu2 %v1656_v50, %s1420_s5 }
  0xeb   : > { %672 = vrot.lane.b32.xlu1 %v1610_v34, %s1422_s8  ;;  %664 = vrot.lane.b32.xlu0 %v1557_v13, %s1422_s8  ;;  %v356_v34 = vrot.slane %v240_v54, 1 }
  0xec   : > { %v497_v24 = vpop.permute.xlu2 %496 }
  0xed   : > { %v1979_v12 = vsel %vm794_vm4, %v790_v0, %v497_v24  ;;  %v477_v9 = vpop.permute.xlu1 %476  ;;  %v475_v29 = vpop.permute.xlu0 %474  ;;  %v2002_v7 = vsel %vm268_vm0, %v354_v30, %v356_v34  ;;  %v361_v0 = vrot.slane %v240_v54, 2 }
  0xee   : > { %v797_v2 = vsel %vm794_vm4, %v780_v46, %v477_v9  ;;  %v796_v18 = vsel %vm794_vm4, %v1836_v57, %v475_v29  ;;  %v241_v29 = vld [vmem:[%s1527_s14 + $0xd8] sm:$0xff] }
  0xef   : > { %v2023_v35 = vsel %vm309_vm1, %v359_v26, %v361_v0  ;;  %v366_v34 = vrot.slane %v241_v29, 1 }
  0xf2   : > { %720 = vrot.lane.b32.xlu2 %v1757_v56, %s1423_s9 }
  0xf3   : > { %712 = vrot.lane.b32.xlu1 %v1712_v20, %s1423_s9  ;;  %642 = vrot.lane.b32.xlu0 %v1817_v31, %s1420_s5 }
  0xf4   : > { %v503_v13 = vpop.permute.xlu2 %502 }
  0xf5   : > { %v1992_v50 = vsel %vm794_vm4, %v793_v62, %v503_v13  ;;  %v483_v38 = vpop.permute.xlu1 %482  ;;  %v481_v46 = vpop.permute.xlu0 %480  ;;  %v897_v13 = vld [vmem:[%s2421_s1 + $0x8] sm:$0xff] }
  0xf6   : > { %v800_v14 = vsel %vm794_vm4, %v783_v53, %v483_v38  ;;  %v1997_v57 = vsel %vm794_vm4, %v1847_v63, %v481_v46 }
  0xfa   : > { %730 = vrot.lane.b32.xlu2 %v1770_v3, %s1423_s9 }
  0xfb   : > { %690 = vrot.lane.b32.xlu1 %v2002_v7, %s1422_s8  ;;  %682 = vrot.lane.b32.xlu0 %v1679_v59, %s1422_s8 }
  0xfc   : > { %v525_v53 = vpop.permute.xlu2 %524 }
  0xfd   : > { %v2011_v63 = vsel %vm811_vm5, %v797_v2, %v525_v53  ;;  %v489_v19 = vpop.permute.xlu1 %488  ;;  %v487_v52 = vpop.permute.xlu0 %486  ;;  %v896_v53 = vld [vmem:[%s2421_s1] sm:$0xff] }
  0xfe   : > { %v2014_v30 = vsel %vm794_vm4, %v786_v5, %v489_v19  ;;  %v2018_v44 = vsel %vm794_vm4, %v1858_v43, %v487_v52 }
 0x102   : > { %578 = vrot.lane.b32.xlu2 %v1731_v33, %s1421_s6 }
 0x103   : > { %570 = vrot.lane.b32.xlu1 %v1715_v23, %s1421_s6  ;;  %738 = vrot.lane.b32.xlu0 %v2023_v35, %s1423_s9 }
 0x104   : > { %v531_v5 = vpop.permute.xlu2 %530 }
 0x105   : > { %v2032_v17 = vsel %vm811_vm5, %v800_v14, %v531_v5  ;;  %v495_v43 = vpop.permute.xlu1 %494  ;;  %v493_v62 = vpop.permute.xlu0 %492 }
 0x106   : > { %v2035_v31 = vsel %vm794_vm4, %v789_v60, %v495_v43  ;;  %v2039_v26 = vsel %vm794_vm4, %v1871_v22, %v493_v62 }
 0x10a   : > { %626 = vrot.lane.b32.xlu2 %v1588_v25, %s1420_s5 }
 0x10b   : > { %618 = vrot.lane.b32.xlu1 %v1533_v1, %s1420_s5  ;;  %548 = vrot.lane.b32.xlu0 %v1898_v61, %s1419_s30 }
 0x10c   : > { %v2047_v23 = vpop.permute.xlu2 %536 }
 0x10d   : > { %v501_v24 = vpop.permute.xlu1 %500  ;;  %v499_v9 = vpop.permute.xlu0 %498 }
 0x10e   : > { %v2050_v60 = vsel %vm794_vm4, %v792_v40, %v501_v24  ;;  %v2054_v22 = vsel %vm794_vm4, %v1891_v51, %v499_v9 }
 0x112   : > { %666 = vrot.lane.b32.xlu2 %v1578_v21, %s1422_s8 }
 0x113   : > { %596 = vrot.lane.b32.xlu1 %v1921_v32, %s1421_s6  ;;  %588 = vrot.lane.b32.xlu0 %v1773_v4, %s1421_s6 }
 0x114   : > { %v2062_v1 = vpop.permute.xlu2 %544 }
 0x115   : > { %v523_v25 = vpop.permute.xlu1 %522  ;;  %v521_v61 = vpop.permute.xlu0 %520 }
 0x116   : > { %v2065_v40 = vsel %vm811_vm5, %v796_v18, %v523_v25  ;;  %v2069_v51 = vsel %vm811_vm5, %v1914_v27, %v521_v61  ;;  %v900_v27 = vld [vmem:[%s2421_s1 + $0x20] sm:$0xf]  ;;  %v824_v25 = vsel %vm811_vm5, %v1979_v12, %v2062_v1 }
 0x117   : > { %1223 = vmatpush.msk.msra.mxu2 %vm950_vm6, %v900_v27  ;;  %1224 = vmatpush.msk.msra.mxu3 %vm950_vm6, %v900_v27  ;;  %v2095_v18 = vld [vmem:[%s1527_s14 + $0xe0] sm:$0xff] }
 0x118   : > { %1222 = vmatpush.msk.msra.mxu1 %vm950_vm6, %v900_v27  ;;  %1197 = vmatpush.msk.msra.mxu0 %vm950_vm6, %v900_v27  ;;  %v372_v54 = vrot.slane %v2095_v18, 2  ;;  %v367_v46 = vrot.slane %v2095_v18, 1 }
 0x11a   : > { %644 = vrot.lane.b32.xlu2 %v241_v29, %s1420_s5  ;;  %v368_v5 = vsel %vm268_vm0, %v366_v34, %v367_v46 }
 0x11b   : > { %636 = vrot.lane.b32.xlu1 %v1650_v48, %s1420_s5  ;;  %674 = vrot.lane.b32.xlu0 %v1647_v47, %s1422_s8  ;;  %v899_v47 = vld [vmem:[%s2421_s1 + $0x18] sm:$0xff]  ;;  %v898_v48 = vld [vmem:[%s2421_s1 + $0x10] sm:$0xff] }
 0x11c   : > { %v2077_v21 = vpop.permute.xlu2 %632  ;;  %1226 = vmatpush.msra.mxu2 %v899_v47  ;;  %1227 = vmatpush.msra.mxu3 %v899_v47 }
 0x11d   : > { %v2079_v4 = vpop.permute.xlu1 %528  ;;  %v527_v32 = vpop.permute.xlu0 %526  ;;  %1225 = vmatpush.msra.mxu1 %v899_v47  ;;  %966 = vmatpush.msra.mxu0 %v899_v47  ;;  %v243_v47 = vld [vmem:[%s1527_s14 + $0xe8] sm:$0x3] }
 0x11e   : > { %v2086_v2 = vsel %vm811_vm5, %v1935_v16, %v527_v32  ;;  %1229 = vmatpush.msra.mxu2 %v898_v48  ;;  %v371_v16 = vrot.slane %v241_v29, 2  ;;  %1230 = vmatpush.msra.mxu3 %v898_v48 }
 0x11f   : > { %1228 = vmatpush.msra.mxu1 %v898_v48  ;;  %967 = vmatpush.msra.mxu0 %v898_v48  ;;  %v2438_v48 = vld [vmem:[#allocation9_spill] sm:$0xff] }
 0x120   : > { %1232 = vmatpush.msra.mxu2 %v897_v13  ;;  %1233 = vmatpush.msra.mxu3 %v897_v13  ;;  %v373_v52 = vsel %vm309_vm1, %v371_v16, %v372_v54  ;;  %v374_v16 = vrot.slane %v243_v47, 2 }
 0x121   : > { %1231 = vmatpush.msra.mxu1 %v897_v13  ;;  %968 = vmatpush.msra.mxu0 %v897_v13  ;;  %v369_v13 = vrot.slane %v243_v47, 1 }
 0x122   : > { %684 = vrot.lane.b32.xlu2 %v1676_v58, %s1422_s8  ;;  %1235 = vmatpush.msra.mxu2 %v896_v53 }
 0x123   : > { %722 = vrot.lane.b32.xlu1 %v1754_v55, %s1423_s9  ;;  %714 = vrot.lane.b32.xlu0 %v1737_v42, %s1423_s9 }
 0x124   : > { %v689_v38 = vpop.permute.xlu2 %688  ;;  %1236 = vmatpush.msra.mxu3 %v896_v53  ;;  %1234 = vmatpush.msra.mxu1 %v896_v53 }
 0x125   : > { %v535_v58 = vpop.permute.xlu1 %534  ;;  %v533_v14 = vpop.permute.xlu0 %532  ;;  %969 = vmatpush.msra.mxu0 %v896_v53 }
 0x126   : > { %v2113_v0 = vsel %vm811_vm5, %v2018_v44, %v535_v58  ;;  %v2117_v19 = vsel %vm811_vm5, %v1951_v45, %v533_v14  ;;  %v370_v14 = vsel %vm268_vm0, %v367_v46, %v369_v13 }
 0x12a   : > { %740 = vrot.lane.b32.xlu2 %v373_v52, %s1423_s9 }
 0x12b   : > { %732 = vrot.lane.b32.xlu1 %v1791_v15, %s1423_s9  ;;  %692 = vrot.lane.b32.xlu0 %v368_v5, %s1422_s8 }
 0x12c   : > { %v2129_v45 = vpop.permute.xlu2 %568 }
 0x12d   : > { %v541_v44 = vpop.permute.xlu1 %540  ;;  %v2131_v43 = vpop.permute.xlu0 %538 }
 0x12e   : > { %v2135_v62 = vsel %vm811_vm5, %v2039_v26, %v541_v44 }
 0x132   : > { %542 = vrot.lane.b32.xlu2 %v1679_v59, %s1419_s30 }
 0x133   : > { %580 = vrot.lane.b32.xlu1 %v1757_v56, %s1421_s6  ;;  %572 = vrot.lane.b32.xlu0 %v1712_v20, %s1421_s6  ;;  %v820_v20 = vsel %vm811_vm5, %v2014_v30, %v2047_v23 }
 0x134   : > { %v2143_v15 = vpop.permute.xlu2 %616 }
 0x135   : > { %v593_v24 = vpop.permute.xlu1 %592  ;;  %v585_v9 = vpop.permute.xlu0 %584 }
 0x13a   : > { %628 = vrot.lane.b32.xlu2 %v1625_v39, %s1420_s5  ;;  %v841_v39 = vsel %vm828_vm7, %v824_v25, %v593_v24 }
 0x13b   : > { %620 = vrot.lane.b32.xlu1 %v1597_v28, %s1420_s5  ;;  %550 = vrot.lane.b32.xlu0 %v2002_v7, %s1419_s30  ;;  %v837_v28 = vsel %vm828_vm7, %v820_v20, %v585_v9  ;;  %s1106_s30 = scalar_lea.hbm %s2424_s4, %s1218_s12 }
 0x13c   : > { %v2151_v59 = vpop.permute.xlu2 %594  ;;  %v854_v12 = vsel %vm845_vm8, %v837_v28, %v2077_v21  ;;  %s1109_s18 = sshll.u32 %s1106_s30, 4  ;;  %s1110_s18 = int_to_ptr.hbm [resolvable:$true] %s1109_s18 }
 0x13d   : > { %v681_v26 = vpop.permute.xlu1 %680  ;;  %v641_v56 = vpop.permute.xlu0 %640 }
 0x13e   : > { %v858_v7 = vsel %vm845_vm8, %v841_v39, %v641_v56  ;;  %v871_v23 = vsel %vm862_vm9, %v854_v12, %v681_v26 }
 0x13f   : > { %v875_v29 = vsel %vm862_vm9, %v858_v7, %v689_v38  ;;  %v375_v38 = vsel %vm309_vm1, %v372_v54, %v374_v16 }
 0x142   : > { %668 = vrot.lane.b32.xlu2 %v1616_v36, %s1422_s8 }
 0x143   : > { %598 = vrot.lane.b32.xlu1 %v2023_v35, %s1421_s6  ;;  %590 = vrot.lane.b32.xlu0 %v1770_v3, %s1421_s6  ;;  %v2437_v3 = vld [vmem:[#allocation8_spill] sm:$0xff] }
 0x144   : > { %v635_v30 = vpop.permute.xlu2 %634 }
 0x145   : > { %v737_v1 = vpop.permute.xlu1 %736  ;;  %v729_v61 = vpop.permute.xlu0 %728 }
 0x146   : > { %v888_v36 = vsel %vm879_vm10, %v871_v23, %v729_v61  ;;  %v892_v35 = vsel %vm879_vm10, %v875_v29, %v737_v1 }
 0x147   : > { %1206 = vmatmul.msk.f32.vlgmr.msra.gmra.mxu2 %vm901_vm11, %v888_v36  ;;  %1210 = vmatmul.msk.f32.vlgmr.msra.gmra.mxu3 %vm901_vm11, %v892_v35 }
 0x14a   : > { %646 = vrot.lane.b32.xlu2 %v2095_v18, %s1420_s5 }
 0x14b   : > { %638 = vrot.lane.b32.xlu1 %v1653_v49, %s1420_s5  ;;  %676 = vrot.lane.b32.xlu0 %v2437_v3, %s1422_s8 }
 0x14c   : > { %v721_v27 = vpop.permute.xlu2 %720 }
 0x14d   : > { %v547_v21 = vpop.permute.xlu1 %546  ;;  %v577_v32 = vpop.permute.xlu0 %576 }
 0x152   : > { %686 = vrot.lane.b32.xlu2 %v1700_v10, %s1422_s8  ;;  %v816_v10 = vsel %vm811_vm5, %v1997_v57, %v2079_v4  ;;  %v2439_v57 = vld [vmem:[#allocation5_spill] sm:$0xff] }
 0x153   : > { %724 = vrot.lane.b32.xlu1 %v2438_v48, %s1423_s9  ;;  %716 = vrot.lane.b32.xlu0 %v1734_v41, %s1423_s9  ;;  %v833_v41 = vsel %vm828_vm7, %v816_v10, %v577_v32 }
 0x154   : > { %v731_v58 = vpop.permute.xlu2 %730 }
 0x155   : > { %v587_v34 = vpop.permute.xlu1 %586  ;;  %v625_v49 = vpop.permute.xlu0 %624 }
 0x156   : > { %v850_v54 = vsel %vm845_vm8, %v833_v41, %v625_v49 }
 0x15a   : > { %742 = vrot.lane.b32.xlu2 %v375_v38, %s1423_s9 }
 0x15b   : > { %734 = vrot.lane.b32.xlu1 %v1788_v11, %s1423_s9  ;;  %694 = vrot.lane.b32.xlu0 %v370_v14, %s1422_s8  ;;  %v829_v11 = vsel %vm828_vm7, %v2069_v51, %v2129_v45  ;;  %v821_v51 = vsel %vm811_vm5, %v1968_v8, %v2131_v43  ;;  %v2440_v45 = vld [vmem:[#allocation7_spill] sm:$0xff]  ;;  %v825_v43 = vsel %vm811_vm5, %v2054_v22, %v547_v21 }
 0x15c   : > { %v579_v5 = vpop.permute.xlu2 %578  ;;  %v846_v4 = vsel %vm845_vm8, %v829_v11, %v2143_v15  ;;  %v842_v28 = vsel %vm828_vm7, %v825_v43, %v2151_v59 }
 0x15d   : > { %v673_v53 = vpop.permute.xlu1 %672  ;;  %v665_v52 = vpop.permute.xlu0 %664  ;;  %v834_v32 = vsel %vm828_vm7, %v2032_v17, %v579_v5 }
 0x15e   : > { %v867_v18 = vsel %vm862_vm9, %v850_v54, %v673_v53  ;;  %v863_v44 = vsel %vm862_vm9, %v846_v4, %v665_v52 }
 0x15f   : > { %v884_v46 = vsel %vm879_vm10, %v867_v18, %v721_v27 }
 0x160   : > { %1202 = vmatmul.msk.f32.vlgmr.msra.gmra.mxu1 %vm901_vm11, %v884_v46 }
 0x162   : > { %622 = vrot.lane.b32.xlu2 %v2439_v57, %s1420_s5 }
 0x163   : > { %582 = vrot.lane.b32.xlu1 %v1754_v55, %s1421_s6  ;;  %574 = vrot.lane.b32.xlu0 %v1737_v42, %s1421_s6  ;;  %v838_v55 = vsel %vm828_vm7, %v821_v51, %v587_v34  ;;  %v2441_v42 = vld [vmem:[#allocation6_spill] sm:$0xff] }
 0x164   : > { %v627_v15 = vpop.permute.xlu2 %626  ;;  %v855_v20 = vsel %vm845_vm8, %v838_v55, %v635_v30 }
 0x165   : > { %v713_v24 = vpop.permute.xlu1 %712  ;;  %v643_v9 = vpop.permute.xlu0 %642  ;;  %v851_v27 = vsel %vm845_vm8, %v834_v32, %v627_v15 }
 0x166   : > { %v880_v26 = vsel %vm879_vm10, %v863_v44, %v713_v24 }
 0x167   : > { %1198 = vmatmul.msk.f32.vlgmr.msra.gmra.mxu0 %vm901_vm11, %v880_v26 }
 0x16a   : > { %678 = vrot.lane.b32.xlu2 %v2440_v45, %s1422_s8 }
 0x16b   : > { %670 = vrot.lane.b32.xlu1 %v2441_v42, %s1422_s8  ;;  %630 = vrot.lane.b32.xlu0 %v1619_v37, %s1420_s5  ;;  %v859_v37 = vsel %vm845_vm8, %v842_v28, %v643_v9  ;;  %s202_s5 = sand.u32 1, %s1390_s16   ;;  %s1334_s8 = sshra.s32 %s1110_s18, 4  ;;  %s1335_s8 = int_to_ptr.hbm [resolvable:$true] %s1334_s8 }
 0x16c   : > { %v667_v23 = vpop.permute.xlu2 %666  ;;  %s1092_s19 = scalar_lea.sflag [#allocation3], %s202_s5  ;;  %p1341_p2 = scmp.lt.s32.totalorder %s1335_s8, %s2424_s4 }
 0x16d   : > { %v691_v56 = vpop.permute.xlu1 %690  ;;  %v683_v25 = vpop.permute.xlu0 %682 }
 0x16e   : > { %v872_v39 = vsel %vm862_vm9, %v855_v20, %v683_v25  ;;  %v876_v7 = vsel %vm862_vm9, %v859_v37, %v691_v56 }
 0x16f   : > { %v889_v8 = vsel %vm879_vm10, %v872_v39, %v731_v58 }
 0x170   : > { %1207 = vmatmul.msk.f32.gmra.mxu2 %vm901_vm11, %v889_v8 }
 0x173   : > { %726 = vrot.lane.b32.xlu1 %v1776_v6, %s1423_s9  ;;  %718 = vrot.lane.b32.xlu0 %v1731_v33, %s1423_s9  ;;  %s1193_s9 = sshll.u32 %s202_s5, 7 }
 0x174   : > { %v645_v59 = vpop.permute.xlu2 %644  ;;  %s2315_s23 = scalar_lea.vmem [#allocation2], %s1193_s9  ;;  %s1336_s9 = scalar_lea.hbm %s1335_s8, 128 }
 0x175   : > { %v571_v12 = vpop.permute.xlu1 %570  ;;  %v739_v30 = vpop.permute.xlu0 %738  ;;  %s1107_s6 = sshll.u32 %s2315_s23, 4  ;;  %p1337_p13 = scmp.ne.s32.totalorder %s1335_s8, %s1336_s9  ;;  %s1108_s6 = int_to_ptr.vmem [resolvable:$true] %s1107_s6 }
 0x176   : > { %v893_v22 = vsel %vm879_vm10, %v876_v7, %v739_v30  ;;  %v830_v33 = vsel %vm828_vm7, %v2065_v40, %v571_v12  ;;  %v2298_v30 = vld [vmem:[%s2423_s3] ss:$0 sm:$0xff]  ;;  %p1342_p4 = scmp.lt.s32.totalorder %s1340_s11, %s1336_s9 }
 0x177   : > { %1211 = vmatmul.msk.f32.gmra.mxu3 %vm901_vm11, %v893_v22  ;;  %p1338_p0 = pnand %p1337_p13, %p1501_p3 }
 0x178   : > { %p1343_p5 = por %p1342_p4, %p1341_p2 }
 0x179   : > { %p1339_p1 = pneg %p1338_p0 }
 0x17b   : > { %p1344_p6 = pnand %p1343_p5, %p1339_p1 }
 0x17c   : > { %v685_v6 = vpop.permute.xlu2 %684 }
 0x17d   : > { %v619_v1 = vpop.permute.xlu1 %618  ;;  %v549_v61 = vpop.permute.xlu0 %548 }
 0x17e   : > { %v847_v21 = vsel %vm845_vm8, %v830_v33, %v619_v1  ;;  %v826_v17 = vsel %vm811_vm5, %v2050_v60, %v549_v61 }
 0x17f   : > { %v864_v34 = vsel %vm862_vm9, %v847_v21, %v667_v23 }
 0x184   : > { %v741_v47 = vpop.permute.xlu2 %740 }
 0x185   : > { %v597_v29 = vpop.permute.xlu1 %596  ;;  %v589_v36 = vpop.permute.xlu0 %588 }
 0x186   : > { %v839_v40 = vsel %vm828_vm7, %v2135_v62, %v589_v36  ;;  %v843_v58 = vsel %vm828_vm7, %v826_v17, %v597_v29 }
 0x187   : > { %v860_v41 = vsel %vm845_vm8, %v843_v58, %v645_v59 }
 0x18c   : > { %v543_v52 = vpop.permute.xlu2 %542 }
 0x18d   : > { %v637_v35 = vpop.permute.xlu1 %636  ;;  %v675_v3 = vpop.permute.xlu0 %674 }
 0x18e   : > { %v868_v48 = vsel %vm862_vm9, %v851_v27, %v675_v3  ;;  %v856_v14 = vsel %vm845_vm8, %v839_v40, %v637_v35 }
 0x18f   : > { %v873_v53 = vsel %vm862_vm9, %v856_v14, %v685_v6 }
 0x194   : > { %v629_v57 = vpop.permute.xlu2 %628 }
 0x195   : > { %v723_v16 = vpop.permute.xlu1 %722  ;;  %v715_v13 = vpop.permute.xlu0 %714 }
 0x196   : > { %v881_v49 = vsel %vm879_vm10, %v864_v34, %v715_v13  ;;  %v885_v38 = vsel %vm879_vm10, %v868_v48, %v723_v16 }
 0x197   : > { %1199 = vmatmul.msk.f32.gmra.mxu0 %vm901_vm11, %v881_v49  ;;  %1203 = vmatmul.msk.f32.gmra.mxu1 %vm901_vm11, %v885_v38 }
 0x19c   : > { %v669_v44 = vpop.permute.xlu2 %668 }
 0x19d   : > { %v733_v10 = vpop.permute.xlu1 %732  ;;  %v693_v54 = vpop.permute.xlu0 %692 }
 0x19e   : > { %v877_v18 = vsel %vm862_vm9, %v860_v41, %v693_v54  ;;  %v890_v46 = vsel %vm879_vm10, %v873_v53, %v733_v10 }
 0x19f   : > { %1208 = vmatmul.msk.f32.gmra.mxu2 %vm901_vm11, %v890_v46  ;;  %v894_v60 = vsel %vm879_vm10, %v877_v18, %v741_v47 }
 0x1a0   : > { %1212 = vmatmul.msk.f32.gmra.mxu3 %vm901_vm11, %v894_v60 }
 0x1a4   : > { %v647_v26 = vpop.permute.xlu2 %646 }
 0x1a5   : > { %v581_v62 = vpop.permute.xlu1 %580  ;;  %v573_v5 = vpop.permute.xlu0 %572 }
 0x1a6   : > { %v835_v45 = vsel %vm828_vm7, %v2117_v19, %v581_v62  ;;  %v831_v42 = vsel %vm828_vm7, %v2011_v63, %v573_v5  ;;  %v2287_v63 = vld [vmem:[%s2422_s2] ss:$0 sm:$0xff]  ;;  %v823_v19 = vsel %vm811_vm5, %v2035_v31, %v543_v52 }
 0x1a7   : > { %v852_v56 = vsel %vm845_vm8, %v835_v45, %v629_v57 }
 0x1ac   : > { %v687_v20 = vpop.permute.xlu2 %686 }
 0x1ad   : > { %v621_v11 = vpop.permute.xlu1 %620  ;;  %v551_v4 = vpop.permute.xlu0 %550 }
 0x1ae   : > { %v848_v15 = vsel %vm845_vm8, %v831_v42, %v621_v11  ;;  %v827_v7 = vsel %vm811_vm5, %v1992_v50, %v551_v4 }
 0x1af   : > { %v865_v25 = vsel %vm862_vm9, %v848_v15, %v669_v44 }
 0x1b4   : > { %v743_v50 = vpop.permute.xlu2 %742 }
 0x1b5   : > { %v599_v24 = vpop.permute.xlu1 %598  ;;  %v591_v9 = vpop.permute.xlu0 %590 }
 0x1b6   : > { %v840_v12 = vsel %vm828_vm7, %v823_v19, %v591_v9  ;;  %v844_v23 = vsel %vm828_vm7, %v827_v7, %v599_v24 }
 0x1b7   : > { %v861_v29 = vsel %vm845_vm8, %v844_v23, %v647_v26 }
 0x1bc   : > { %v623_v34 = vpop.permute.xlu2 %622 }
 0x1bd   : > { %v639_v51 = vpop.permute.xlu1 %638  ;;  %v677_v55 = vpop.permute.xlu0 %676 }
 0x1be   : > { %v869_v39 = vsel %vm862_vm9, %v852_v56, %v677_v55  ;;  %v857_v22 = vsel %vm845_vm8, %v840_v12, %v639_v51 }
 0x1bf   : > { %v874_v36 = vsel %vm862_vm9, %v857_v22, %v687_v20 }
 0x1c4   : > { %v679_v53 = vpop.permute.xlu2 %678 }
 0x1c5   : > { %v725_v8 = vpop.permute.xlu1 %724  ;;  %v717_v43 = vpop.permute.xlu0 %716 }
 0x1c6   : > { %v882_v28 = vsel %vm879_vm10, %v865_v25, %v717_v43  ;;  %v886_v37 = vsel %vm879_vm10, %v869_v39, %v725_v8 }
 0x1c7   : > { %1200 = vmatmul.msk.f32.gmra.mxu0 %vm901_vm11, %v882_v28  ;;  %1204 = vmatmul.msk.f32.gmra.mxu1 %vm901_vm11, %v886_v37 }
 0x1ca   : > { %v995_v1 = vpop.f32.mrf.mxu2  ;;  %v1007_v61 = vpop.f32.mrf.mxu3 }
 0x1cb   : > { %v1031_v31 = vmul.f32 %v2287_v63, %v995_v1  ;;  %v1035_v59 = vmul.f32 %v2287_v63, %v1007_v61 }
 0x1cd   : > { %v1051_v6 = vadd.f32 %v2298_v30, %v1031_v31  ;;  %v1055_v35 = vadd.f32 %v2298_v30, %v1035_v59  ;;  %v735_v3 = vpop.permute.xlu1 %734  ;;  %v695_v33 = vpop.permute.xlu0 %694 }
 0x1ce   : > { %v878_v21 = vsel %vm862_vm9, %v861_v29, %v695_v33  ;;  %v891_v32 = vsel %vm879_vm10, %v874_v36, %v735_v3 }
 0x1cf   : > { %v1067_v27 = vmax.f32 %v1051_v6, 0.0  ;;  %v1071_v47 = vmax.f32 %v1055_v35, 0.0  ;;  %1209 = vmatmul.msk.f32.gmra.mxu2 %vm901_vm11, %v891_v32  ;;  %v895_v48 = vsel %vm879_vm10, %v878_v21, %v743_v50 }
 0x1d0   : > { %1213 = vmatmul.msk.f32.gmra.mxu3 %vm901_vm11, %v895_v48 }
 0x1d1   : > { %1083 = vst [vmem:[%s2315_s23 + $0x40] sm:$0xff] %v1067_v27 }
 0x1d2   : > { %1087 = vst [vmem:[%s2315_s23 + $0x60] sm:$0xff] %v1071_v47 }
 0x1d5   : > { %v583_v16 = vpop.permute.xlu1 %582  ;;  %v575_v13 = vpop.permute.xlu0 %574 }
 0x1d6   : > { %v836_v14 = vsel %vm828_vm7, %v2113_v0, %v583_v16  ;;  %v832_v10 = vsel %vm828_vm7, %v2086_v2, %v575_v13 }
 0x1d7   : > { %v849_v18 = vsel %vm845_vm8, %v832_v10, %v623_v34 }
 0x1dd   : > { %v671_v49 = vpop.permute.xlu1 %670  ;;  %v983_v38 = vpop.f32.mrf.mxu1 }
 0x1de   : > { %v1027_v17 = vmul.f32 %v2287_v63, %v983_v38  ;;  %v631_v40 = vpop.permute.xlu0 %630  ;;  %v866_v0 = vsel %vm862_vm9, %v849_v18, %v671_v49 }
 0x1df   : > { %v853_v54 = vsel %vm845_vm8, %v836_v14, %v631_v40 }
 0x1e0   : > { %v1047_v58 = vadd.f32 %v2298_v30, %v1027_v17  ;;  %v870_v46 = vsel %vm862_vm9, %v853_v54, %v679_v53 }
 0x1e2   : > { %v1063_v41 = vmax.f32 %v1047_v58, 0.0 }
 0x1e4   : > { %1079 = vst [vmem:[%s2315_s23 + $0x20] sm:$0xff] %v1063_v41  ;;  %v971_v52 = vpop.f32.mrf.mxu0 }
 0x1e5   : > { %v1023_v60 = vmul.f32 %v2287_v63, %v971_v52  ;;  %v727_v62 = vpop.permute.xlu1 %726 }
 0x1e6   : > { %v719_v5 = vpop.permute.xlu0 %718  ;;  %v887_v2 = vsel %vm879_vm10, %v870_v46, %v727_v62 }
 0x1e7   : > { %v1043_v57 = vadd.f32 %v2298_v30, %v1023_v60  ;;  %v883_v11 = vsel %vm879_vm10, %v866_v0, %v719_v5  ;;  %1205 = vmatmul.msk.f32.gmra.mxu1 %vm901_vm11, %v887_v2 }
 0x1e8   : > { %1201 = vmatmul.msk.f32.gmra.mxu0 %vm901_vm11, %v883_v11 }
 0x1e9   : > { %v1059_v4 = vmax.f32 %v1043_v57, 0.0 }
 0x1eb   : > { %1075 = vst [vmem:[%s2315_s23] sm:$0xff] %v1059_v4 }
 0x1f3   : > { %v998_v44 = vpop.f32.mrf.mxu2 }
 0x1f4   : > { %v1032_v24 = vmul.f32 %v2287_v63, %v998_v44 }
 0x1f6   : > { %v1052_v9 = vadd.f32 %v2298_v30, %v1032_v24 }
 0x1f8   : > { %v1068_v26 = vmax.f32 %v1052_v9, 0.0 }
 0x1fa   : > { %1084 = vst [vmem:[%s2315_s23 + $0x48] sm:$0xff] %v1068_v26  ;;  %v1010_v51 = vpop.f32.mrf.mxu3 }
 0x1fb   : > { %v1036_v55 = vmul.f32 %v2287_v63, %v1010_v51 }
 0x1fd   : > { %v1056_v45 = vadd.f32 %v2298_v30, %v1036_v55 }
 0x1ff   : > { %v1072_v42 = vmax.f32 %v1056_v45, 0.0 }
 0x201   : > { %1088 = vst [vmem:[%s2315_s23 + $0x68] sm:$0xff] %v1072_v42 }
 0x214   : > { %v974_v15 = vpop.f32.mrf.mxu0  ;;  %v986_v56 = vpop.f32.mrf.mxu1 }
 0x215   : > { %v1024_v20 = vmul.f32 %v2287_v63, %v974_v15  ;;  %v1028_v25 = vmul.f32 %v2287_v63, %v986_v56 }
 0x217   : > { %v1044_v39 = vadd.f32 %v2298_v30, %v1024_v20  ;;  %v1048_v8 = vadd.f32 %v2298_v30, %v1028_v25 }
 0x219   : > { %v1060_v43 = vmax.f32 %v1044_v39, 0.0  ;;  %v1064_v28 = vmax.f32 %v1048_v8, 0.0 }
 0x21b   : > { %1076 = vst [vmem:[%s2315_s23 + $0x8] sm:$0xff] %v1060_v43 }
 0x21c   : > { %1080 = vst [vmem:[%s2315_s23 + $0x28] sm:$0xff] %v1064_v28 }
 0x222   : > { %v1001_v37 = vpop.f32.mrf.mxu2 }
 0x223   : > { %v1033_v19 = vmul.f32 %v2287_v63, %v1001_v37  ;;  %v1013_v7 = vpop.f32.mrf.mxu3 }
 0x224   : > { %v1037_v12 = vmul.f32 %v2287_v63, %v1013_v7 }
 0x225   : > { %v1053_v23 = vadd.f32 %v2298_v30, %v1033_v19 }
 0x226   : > { %v1057_v22 = vadd.f32 %v2298_v30, %v1037_v12 }
 0x227   : > { %v1069_v1 = vmax.f32 %v1053_v23, 0.0 }
 0x228   : > { %v1073_v61 = vmax.f32 %v1057_v22, 0.0 }
 0x229   : > { %1085 = vst [vmem:[%s2315_s23 + $0x50] sm:$0xff] %v1069_v1 }
 0x22a   : > { %1089 = vst [vmem:[%s2315_s23 + $0x70] sm:$0xff] %v1073_v61 }
 0x244   : > { %v977_v31 = vpop.f32.mrf.mxu0  ;;  %v989_v59 = vpop.f32.mrf.mxu1 }
 0x245   : > { %v1025_v50 = vmul.f32 %v2287_v63, %v977_v31  ;;  %v1029_v29 = vmul.f32 %v2287_v63, %v989_v59 }
 0x247   : > { %v1045_v36 = vadd.f32 %v2298_v30, %v1025_v50  ;;  %v1049_v6 = vadd.f32 %v2298_v30, %v1029_v29 }
 0x249   : > { %v1061_v35 = vmax.f32 %v1045_v36, 0.0  ;;  %v1065_v3 = vmax.f32 %v1049_v6, 0.0 }
 0x24b   : > { %1077 = vst [vmem:[%s2315_s23 + $0x10] sm:$0xff] %v1061_v35 }
 0x24c   : > { %1081 = vst [vmem:[%s2315_s23 + $0x30] sm:$0xff] %v1065_v3 }
 0x252   : > { %v1004_v33 = vpop.f32.mrf.mxu2 }
 0x253   : > { %v1034_v21 = vmul.f32 %v2287_v63, %v1004_v33  ;;  %v1016_v32 = vpop.f32.mrf.mxu3 }
 0x254   : > { %v1038_v27 = vmul.f32 %v2287_v63, %v1016_v32 }
 0x255   : > { %v1054_v47 = vadd.f32 %v2298_v30, %v1034_v21 }
 0x256   : > { %v1058_v48 = vadd.f32 %v2298_v30, %v1038_v27 }
 0x257   : > { %v1070_v16 = vmax.f32 %v1054_v47, 0.0 }
 0x258   : > { %v1074_v13 = vmax.f32 %v1058_v48, 0.0 }
 0x259   : > { %1086 = vst [vmem:[%s2315_s23 + $0x58] sm:$0xff] %v1070_v16 }
 0x25a   : > { %1090 = vst [vmem:[%s2315_s23 + $0x78] sm:$0xff] %v1074_v13 }
 0x264   : > { %v992_v34 = vpop.f32.mrf.mxu1 }
 0x265   : > { %v980_v49 = vpop.f32.mrf.mxu0  ;;  %v1030_v38 = vmul.f32 %v2287_v63, %v992_v34 }
 0x266   : > { %v1026_v17 = vmul.f32 %v2287_v63, %v980_v49 }
 0x267   : > { %v1050_v40 = vadd.f32 %v2298_v30, %v1030_v38 }
 0x268   : > { %v1046_v58 = vadd.f32 %v2298_v30, %v1026_v17 }
 0x269   : > { %v1066_v14 = vmax.f32 %v1050_v40, 0.0 }
 0x26a   : > { %v1062_v10 = vmax.f32 %v1046_v58, 0.0 }
 0x26b   : > { %1082 = vst [vmem:[%s2315_s23 + $0x38] sm:$0xff] %v1066_v14 }
 0x26c   : > { %1078 = vst [vmem:[%s2315_s23 + $0x18] sm:$0xff] %v1062_v10 }
 0x26d   : > { %1347 = shalt.err (!%p1344_p6)
}
 0x26e   : > { %s1424_s5 = smov 128  }
 0x26f   : > { %1238 = dma.vmem_to_hbm [thread:$0]  (%p1501_p3), %s1108_s6, 2048, %s1110_s18, %s1092_s19, %s1424_s5, %s1424_s5, %s1417_s24  }
 0x270 PF: > { %p1244_p7 = scmp.ge.s32.totalorder %s1414_s22, 2  ;;  %s1124_s23 = sand.u32 1, %s1386_s15  }
 0x271   : > { %s1125_s14 = scalar_lea.sflag [#allocation3], %s1124_s23 }
 0x272   : > { %p1241_p9 = pnand %p1244_p7, %p1510_p8 }
 0x274   : > { %p1242_p10 = pneg %p1241_p9 }
 0x276   : > { %1381 = dma.done.wait (%p1242_p10), %s1125_s14, 2048  }
 0x277   : > { %1383 = vsyncadd (%p1242_p10), %s1125_s14, 4294965248  ;;  %s17_s22 = sadd.s32 1, %s1414_s22   ;;  %s2442_s15 = smov %s1390_s16 }
 0x278   : > { %p14_p11 = scmp.ge.s32.totalorder %s17_s22, 6   ;;  %s2443_s16 = smov %s1394_s17 }
 0x279   : > { %s2444_s17 = smov %s1519_s7  ;;  %s2445_s18 = smov %s1406_s20 }
 0x27a   : > { %s2446_s19 = smov %s1410_s21  ;;  %s2447_s20 = smov %s2450_s25 }
 0x27b   : > { %s2448_s21 = smov %s2454_s26  ;;  %16 = sbr.rel (!%p14_p11) target bundleno = 5 (0x5), region = 72 }
 0x280   :  { %1131 = vsyncpa [#allocation3], 1 }
 0x281   :  { %1133 = vsyncpa [#allocation3 + $0x1], 1 }

</bundles_post_ra>
